<compile_context>
chip_gen: v7x
topology: tpu7x:2x2x1
jax: 0.10.0
libtpu: 0.0.40
codegen_flags: <defaults>
</compile_context>

<pallas_src>
import jax
import jax.numpy as jnp
from jax.experimental import pallas as pl
from jax.experimental.pallas import tpu as pltpu


def _critic_kernel(x_ref, w1_ref, b1_ref, w2_ref, b2_ref, o_ref):
    # Layer 1: [TB, in] @ [in, hidden] on the MXU, fp32 accumulation.
    h = jnp.dot(x_ref[...], w1_ref[...], preferred_element_type=jnp.float32)
    h = jnp.maximum(h + b1_ref[...], 0.0)          # bias + ReLU on the VPU
    # Layer 2 has a single output unit -> elementwise multiply (VPU) and a
    # cross-lane sum (XLU) instead of paying MXU push/pop for an N=1 matmul.
    v = jnp.sum(h * w2_ref[...], axis=-1)          # [TB]
    # Lane-dense store: output block is (1, TB); b2 is a scalar in SMEM.
    o_ref[...] = (v + b2_ref[0])[None, :].astype(o_ref.dtype)


def critic_forward(x, w1, b1, w2, b2, *, tb=1024):
    """x: [B, input_size] f32; w1: [in, hidden]; b1: [1, hidden];
    w2: [1, hidden]; b2: [1]  ->  value: [B, 1] f32."""
    B, in_size = x.shape
    hidden = w1.shape[1]

    if B > tb:
        # Multi-tile path: TB must be a multiple of 128 so the lane-dense
        # (1, TB) output block satisfies the (8, 128) constraint.
        assert tb % 128 == 0, "tb must be a multiple of 128 for tiled runs"
        TB = tb
    else:
        TB = B                      # single tile == full array dims, always legal
    n_tiles = pl.cdiv(B, TB)
    B_pad = n_tiles * TB
    if B_pad != B:
        x = jnp.pad(x, ((0, B_pad - B), (0, 0)))   # zero-pad tail tile

    # Advisory cost hint for XLA's scheduler around this custom call.
    flops = 2 * B_pad * in_size * hidden + 3 * B_pad * hidden
    bytes_accessed = (B_pad * in_size * 4      # observations streamed in
                      + in_size * hidden * 4   # w1
                      + 3 * hidden * 4 + 4     # b1, w2, b2
                      + B_pad * 4)             # values streamed out

    out = pl.pallas_call(
        _critic_kernel,
        out_shape=jax.ShapeDtypeStruct((1, B_pad), jnp.float32),
        grid=(n_tiles,),
        in_specs=[
            # Batch-tiled observations: double-buffered HBM->VMEM pipeline.
            pl.BlockSpec((TB, in_size), lambda i: (i, 0)),
            # Weights/biases: constant block index -> fetched once, VMEM resident.
            pl.BlockSpec((in_size, hidden), lambda i: (0, 0)),
            pl.BlockSpec((1, hidden), lambda i: (0, 0)),
            pl.BlockSpec((1, hidden), lambda i: (0, 0)),
            # Scalar second-layer bias lives in SMEM.
            pl.BlockSpec(memory_space=pltpu.MemorySpace.SMEM),
        ],
        out_specs=pl.BlockSpec((1, TB), lambda i: (0, i)),
        compiler_params=pltpu.CompilerParams(
            # Batch tiles are independent -> megacore sharding on v7x.
            dimension_semantics=("parallel",),
        ),
        cost_estimate=pl.CostEstimate(
            flops=flops, transcendentals=0, bytes_accessed=bytes_accessed
        ),
    )(x, w1, b1, w2, b2)

    # (1, B_pad) lane-dense row -> (B, 1) column expected by callers.
    return out[0, :B].reshape(B, 1)


def init_critic_params(key, input_size, hidden_size):
    """Deterministic init mimicking nn.Linear's default U(-1/sqrt(fan_in), ...)."""
    k1, k2, k3, k4 = jax.random.split(key, 4)
    bound1 = 1.0 / (input_size ** 0.5)
    bound2 = 1.0 / (hidden_size ** 0.5)
    # w1 stored as [in, out] (transpose of torch's [out, in]) so kernel does x @ W.
    w1 = jax.random.uniform(k1, (input_size, hidden_size), jnp.float32, -bound1, bound1)
    b1 = jax.random.uniform(k2, (1, hidden_size), jnp.float32, -bound1, bound1)
    # w2 stored as a [1, hidden] row for the VPU-multiply + XLU-reduce second layer.
    w2 = jax.random.uniform(k3, (1, hidden_size), jnp.float32, -bound2, bound2)
    b2 = jax.random.uniform(k4, (1,), jnp.float32, -bound2, bound2)
    return w1, b1, w2, b2


if __name__ == "__main__":
    key = jax.random.PRNGKey(0)
    batch, input_size, hidden_size = 8, 16, 32

    k_obs, k_params, k_big = jax.random.split(key, 3)
    obs = jax.random.normal(k_obs, (batch, input_size), jnp.float32)
    w1, b1, w2, b2 = init_critic_params(k_params, input_size, hidden_size)

    def ref_fn(x):
        # Same math as the torch module (x @ W1.T + b1 -> ReLU -> @ W2.T + b2),
        # expressed with the pre-transposed weight storage used here.
        return jnp.maximum(x @ w1 + b1, 0.0) @ w2.T + b2

    # Small single-tile case.
    value = jax.block_until_ready(critic_forward(obs, w1, b1, w2, b2))
    assert value.shape == (batch, 1)
    assert jnp.allclose(value, ref_fn(obs), atol=1e-5, rtol=1e-5)

    # Exercise the tiled + padded multi-step pipeline path (B not a multiple of TB).
    obs_big = jax.random.normal(k_big, (300, input_size), jnp.float32)
    value_big = jax.block_until_ready(critic_forward(obs_big, w1, b1, w2, b2, tb=128))
    assert value_big.shape == (300, 1)
    assert jnp.allclose(value_big, ref_fn(obs_big), atol=1e-5, rtol=1e-5)

    print("KERNEL_OK")
</pallas_src>

<mosaic_0001>
module attributes {stable_mosaic.version = 11 : i64} {
  func.func @_critic_kernel(%arg0: i32, %arg1: memref<8x16xf32, #tpu.memory_space<vmem>>, %arg2: memref<16x32xf32, #tpu.memory_space<vmem>>, %arg3: memref<1x32xf32, #tpu.memory_space<vmem>>, %arg4: memref<1x32xf32, #tpu.memory_space<vmem>>, %arg5: memref<1xf32, #tpu.memory_space<smem>>, %arg6: memref<1x8xf32, #tpu.memory_space<vmem>>) attributes {dimension_semantics = [#tpu.dimension_semantics<parallel>], iteration_bounds = array<i64: 1>, scalar_prefetch = 0 : i64, scratch_operands = 0 : i64, tpu.core_type = #tpu.core_type<tc>, window_params = [{transform_indices = @transform_0, window_bounds = array<i64: 8, 16>}, {pipeline_mode = #tpu.pipeline_mode<synchronous>, transform_indices = @transform_1, window_bounds = array<i64: 16, 32>}, {pipeline_mode = #tpu.pipeline_mode<synchronous>, transform_indices = @transform_2, window_bounds = array<i64: 1, 32>}, {pipeline_mode = #tpu.pipeline_mode<synchronous>, transform_indices = @transform_3, window_bounds = array<i64: 1, 32>}, {transform_indices = @transform_4, window_bounds = array<i64: 1>}, {transform_indices = @transform_5, window_bounds = array<i64: 1, 8>}]} {
    %c0 = arith.constant 0 : index
    %c0_0 = arith.constant 0 : index
    %0 = vector.load %arg1[%c0, %c0_0] : memref<8x16xf32, #tpu.memory_space<vmem>>, vector<8x16xf32>
    %c0_1 = arith.constant 0 : index
    %c0_2 = arith.constant 0 : index
    %1 = vector.load %arg2[%c0_1, %c0_2] : memref<16x32xf32, #tpu.memory_space<vmem>>, vector<16x32xf32>
    %cst = arith.constant dense<0.000000e+00> : vector<8x32xf32>
    %2 = tpu.matmul %0, %1, %cst {dimension_numbers = #tpu.dot_dimension_numbers<[1], [0], [0], [1], [0, 0, 1, 1], [], []>} : vector<8x16xf32>, vector<16x32xf32>, vector<8x32xf32> -> vector<8x32xf32>
    %c0_3 = arith.constant 0 : index
    %c0_4 = arith.constant 0 : index
    %3 = vector.load %arg3[%c0_3, %c0_4] : memref<1x32xf32, #tpu.memory_space<vmem>>, vector<1x32xf32>
    %4 = vector.broadcast %3 : vector<1x32xf32> to vector<8x32xf32>
    %5 = arith.addf %2, %4 : vector<8x32xf32>
    %cst_5 = arith.constant 0.000000e+00 : f32
    %6 = vector.broadcast %cst_5 : f32 to vector<8x32xf32>
    %7 = arith.maximumf %5, %6 : vector<8x32xf32>
    %c0_6 = arith.constant 0 : index
    %c0_7 = arith.constant 0 : index
    %8 = vector.load %arg4[%c0_6, %c0_7] : memref<1x32xf32, #tpu.memory_space<vmem>>, vector<1x32xf32>
    %9 = vector.broadcast %8 : vector<1x32xf32> to vector<8x32xf32>
    %10 = arith.mulf %7, %9 : vector<8x32xf32>
    %cst_8 = arith.constant dense<0.000000e+00> : vector<8xf32>
    %11 = vector.multi_reduction <add>, %10, %cst_8 [1] : vector<8x32xf32> to vector<8xf32>
    %c0_9 = arith.constant 0 : index
    %12 = memref.load %arg5[%c0_9] : memref<1xf32, #tpu.memory_space<smem>>
    %13 = vector.broadcast %12 : f32 to vector<8xf32>
    %14 = arith.addf %11, %13 : vector<8xf32>
    %15 = vector.shape_cast %14 : vector<8xf32> to vector<1x8xf32>
    %c0_10 = arith.constant 0 : index
    %c0_11 = arith.constant 0 : index
    %16 = vector.load %arg6[%c0_10, %c0_11] : memref<1x8xf32, #tpu.memory_space<vmem>>, vector<1x8xf32>
    tpu.vector_store %arg6[%c0_10, %c0_11], %15 {strides = array<i32>} : memref<1x8xf32, #tpu.memory_space<vmem>>, vector<1x8xf32>,
    return
  }
  func.func @transform_0(%arg0: i32) -> (i32, i32) {
    %c0_i32 = arith.constant 0 : i32
    %c0_i32_0 = arith.constant 0 : i32
    return %arg0, %c0_i32 : i32, i32
  }
  func.func @transform_1(%arg0: i32) -> (i32, i32) {
    %c0_i32 = arith.constant 0 : i32
    %c0_i32_0 = arith.constant 0 : i32
    %c0_i32_1 = arith.constant 0 : i32
    return %c0_i32, %c0_i32_0 : i32, i32
  }
  func.func @transform_2(%arg0: i32) -> (i32, i32) {
    %c0_i32 = arith.constant 0 : i32
    %c0_i32_0 = arith.constant 0 : i32
    %c0_i32_1 = arith.constant 0 : i32
    return %c0_i32, %c0_i32_0 : i32, i32
  }
  func.func @transform_3(%arg0: i32) -> (i32, i32) {
    %c0_i32 = arith.constant 0 : i32
    %c0_i32_0 = arith.constant 0 : i32
    %c0_i32_1 = arith.constant 0 : i32
    return %c0_i32, %c0_i32_0 : i32, i32
  }
  func.func @transform_4(%arg0: i32) -> i32 {
    %c0_i32 = arith.constant 0 : i32
    %c0_i32_0 = arith.constant 0 : i32
    return %c0_i32 : i32
  }
  func.func @transform_5(%arg0: i32) -> (i32, i32) {
    %c0_i32 = arith.constant 0 : i32
    %c0_i32_0 = arith.constant 0 : i32
    return %c0_i32, %arg0 : i32, i32
  }
}

</mosaic_0001>

<bundles_post_ra>
// kernel: tpu_custom_call.1
= control target key start
LH: loop header
LB: loop body
LE: loop exit
PB: predicated region body
PF: predicated region fallthrough
CT: control target
= control target key end

     0   :  { %11 = vsyncpa [#allocation4], 0  ;;  %s360_s0 = inlined_call_operand.hbm [shape: f32[8,16], index: 0, kind: input, shape index: {}]   ;;  %s361_s1 = inlined_call_operand.hbm [shape: f32[16,32], index: 1, kind: input, shape index: {}]   ;;  %s362_s2 = inlined_call_operand.vmem [shape: f32[1,32], index: 2, kind: input, shape index: {}]   ;;  %s363_s3 = inlined_call_operand.vmem [shape: f32[1,32], index: 3, kind: input, shape index: {}]   ;;  %s364_s4 = inlined_call_operand.<no memory space> [shape: f32[1], index: 4, kind: input, shape index: {}]   ;;  %s365_s5 = inlined_call_operand.hbm [shape: f32[1,8], index: 5, kind: output, shape index: {}]  }
   0x1   :  { %12 = vsyncpa [#allocation7], 0 }
   0x2   :  { %13 = vsyncpa [#allocation5], 0  ;;  %s270_s18 = smov [#allocation3]   ;;  %s271_s20 = smov [#allocation6]  }
   0x3   :  { %s20_s19 = sshll.u32 %s270_s18, 4  ;;  %s29_s21 = sshll.u32 %s271_s20, 4  ;;  %s21_s19 = int_to_ptr.vmem [resolvable:$true] %s20_s19  ;;  %s308_s21 = int_to_ptr.vmem [resolvable:$true] %s29_s21 }
   0x4   :  { %s198_s24 = scalar_lea.hbm %s360_s0, 128 }
   0x5   :  { %p199_p0 = scmp.ne.s32.totalorder %s360_s0, %s198_s24  ;;  %p202_p1 = scmp.lt.u32.totalorder %s198_s24, %s360_s0 }
   0x7   :  { %p204_p2 = pnand %p202_p1, %p199_p0 }
   0x9   :  { %207 = shalt.err (!%p204_p2)
}
   0xa   :  { %s208_s29 = scalar_lea.vmem %s21_s19, 128  ;;  %p213_p4 = scmp.lt.s32.totalorder %s21_s19, %s21_s19 }
   0xb   :  { %p209_p3 = scmp.ne.s32.totalorder %s21_s19, %s208_s29  ;;  %p214_p5 = scmp.lt.s32.totalorder %s208_s29, %s208_s29 }
   0xd   :  { %p215_p6 = por %p214_p5, %p213_p4 }
   0xf   :  { %p216_p7 = pnand %p215_p6, %p209_p3 }
  0x11   :  { %219 = shalt.err (!%p216_p7)
}
  0x12   :  { %23 = dma.hbm_to_vmem [thread:$0]  %s360_s0, 128, %s21_s19, [#allocation4]  }
  0x13   :  { %s220_s9 = scalar_lea.hbm %s361_s1, 256 }
  0x14   :  { %p221_p8 = scmp.ne.s32.totalorder %s361_s1, %s220_s9  ;;  %p224_p9 = scmp.lt.u32.totalorder %s220_s9, %s361_s1 }
  0x16   :  { %p226_p10 = pnand %p224_p9, %p221_p8 }
  0x18   :  { %229 = shalt.err (!%p226_p10)
}
  0x19   :  { %s230_s14 = scalar_lea.vmem %s308_s21, 256  ;;  %p235_p12 = scmp.lt.s32.totalorder %s308_s21, %s308_s21 }
  0x1a   :  { %p231_p11 = scmp.ne.s32.totalorder %s308_s21, %s230_s14  ;;  %p236_p13 = scmp.lt.s32.totalorder %s230_s14, %s230_s14 }
  0x1c   :  { %p237_p0 = por %p236_p13, %p235_p12 }
  0x1e   :  { %p238_p1 = pnand %p237_p0, %p231_p11 }
  0x20   :  { %241 = shalt.err (!%p238_p1)
}
  0x21   :  { %s272_s0 = smov 128   ;;  %s273_s15 = smov 8  }
  0x22   :  { %35 = dma.hbm_to_vmem [thread:$0]  %s361_s1, 256, %s308_s21, [#allocation7], %s272_s0, %s272_s0, %s273_s15  }
  0x23   :  { %264 = dma.done.wait [#allocation4], 128  }
  0x24   :  { %265 = vsyncadd [#allocation4], 4294967168 }
  0x25   :  { %266 = dma.done.wait [#allocation7], 256  }
  0x26   :  { %267 = vsyncadd [#allocation7], 4294967040  ;;  %v274_v0 = vmov 0.0|0.0   ;;  %vm275_vm0 = vmmov 0   ;;  %v276_v1 = vmov 0.0   ;;  %v49_v2 = vld [vmem:[#allocation6] sm:$0xff]  ;;  %v149_v14 = vlaneseq }
  0x27   :  { %187 = vmatprep.subr.bf16.mxu0 %v274_v0  ;;  %184 = vmatprep.mubr.msk.f32.mxu0 %vm275_vm0, %v276_v1  ;;  %v50_v3 = vld [vmem:[#allocation6 + $0x8] sm:$0xff]  ;;  %v48_v5 = vld [vmem:[#allocation3] sm:$0xff]  ;;  %vm58_vm1 = vcmask 130048   ;;  %vm141_vm2 = vcmask 261120   ;;  %v146_v17 = vstv %s364_s4  ;;  %vm156_vm3 = vcmask 57344  }
  0x28   :  { %v188_v4 = vpack.c.bf16 %v50_v3, %v49_v2  ;;  %v174_v6 = vld [vmem:[%s362_s2] ss:$0 sm:$0xff]  ;;  %v150_v15 = vand.u32 127, %v149_v14  ;;  %v152_v16 = vshrl.u32 %v149_v14, 7  ;;  %s277_s2 = smov [#allocation8]  }
  0x29   :  { %v176_v10 = vld [vmem:[%s363_s3] ss:$0 sm:$0xff]  ;;  %s164_s23 = sshll.u32 %s277_s2, 4  ;;  %s165_s23 = int_to_ptr.vmem [resolvable:$true] %s164_s23 }
  0x2a   :  { %189 = vmatpush3.bf16.msra.mxu0 %v188_v4  ;;  %v153_v18 = vsub.s32 %v150_v15, %v152_v16  ;;  %s242_s3 = scalar_lea.vmem %s165_s23, 16  ;;  %s246_s24 = scalar_lea.vmem %s165_s23, 32 }
  0x2b   :  { %p243_p2 = scmp.ne.s32.totalorder %s165_s23, %s242_s3  ;;  %p247_p3 = scmp.lt.s32.totalorder %s165_s23, %s165_s23 }
  0x2c   :  { %p248_p4 = scmp.lt.s32.totalorder %s246_s24, %s242_s3 }
  0x2d   :  { %185 = vmatmul.mubr.msk.f32.vlgmr.msra.gmra.mrb[0].mxu0 %vm58_vm1, %v48_v5 }
  0x2e   :  { %p249_p5 = por %p248_p4, %p247_p3 }
  0x30   :  { %p250_p6 = pnand %p249_p5, %p243_p2 }
 0x100   :  { %v128_v7 = vpop.f32.mrb[0].mxu0 }
 0x101   :  { %v129_v8 = vadd.f32 %v174_v6, %v128_v7  ;;  %v186_v9 = vpop.f32.mrb[1].mxu0 }
 0x103   :  { %v132_v11 = vmax.f32 %v129_v8, 0.0 }
 0x105   :  { %v140_v12 = vmul.f32 %v176_v10, %v132_v11 }
 0x107   :  { %v142_v13 = vsel %vm141_vm2, %v140_v12, 0.0 }
 0x108   :  { %143 = vadd.xlane.f32.xlu0 %v142_v13 }
 0x195   :  { %v144_v19 = vpop.xlane.xlu0 %143 }
 0x196   :  { %v147_v20 = vadd.f32 %v146_v17, %v144_v19 }
 0x198   :  { %v154_v21 = vrot.slane %v147_v20, %v153_v18 }
 0x19a   :  { %157 = vst.msk [vmem:[#allocation8] sm:$0x1] %vm156_vm3, %v154_v21 }
 0x19b   :  { %253 = shalt.err (!%p250_p6)
}
 0x19c   :  { %s254_s4 = scalar_lea.hbm %s365_s5, 16 }
 0x19d   :  { %p255_p7 = scmp.ne.s32.totalorder %s365_s5, %s254_s4  ;;  %p258_p8 = scmp.lt.u32.totalorder %s254_s4, %s365_s5 }
 0x19f   :  { %p260_p9 = pnand %p258_p8, %p255_p7 }
 0x1a1   :  { %263 = shalt.err (!%p260_p9)
}
 0x1a2   :  { %167 = dma.vmem_to_hbm [thread:$0]  %s165_s23, 16, %s365_s5, [#allocation5]  }
 0x1a3   :  { %268 = dma.done.wait [#allocation5], 16  }
 0x1a4   :  { %269 = vsyncadd [#allocation5], 4294967280 }
 0x1a5   :  { %171 = vsyncpa [#allocation4], 1 }
 0x1a6   :  { %172 = vsyncpa [#allocation7], 1 }
 0x1a7   :  { %173 = vsyncpa [#allocation5], 1 }

</bundles_post_ra>
